<compile_context>
chip_gen: v5e
topology: v5e:2x2
jax: 0.10.0
libtpu: 0.0.40
codegen_flags: <defaults>
</compile_context>

<pallas_src>
import functools

import jax
import jax.numpy as jnp
from jax.experimental import pallas as pl
from jax.experimental.pallas import tpu as pltpu


HIDDEN_SIZE = 10
INPUT_SIZE = 1
OUTPUT_SIZE = 1


def _rnn_fc_kernel(x_ref,        # (T, B, I)   time-major inputs
                   h0_ref,       # (B, H)      initial hidden state
                   w_ih_ref,     # (I, H)      == W_ih^T
                   w_hh_ref,     # (H, H)      == W_hh^T
                   b_rnn_ref,    # (1, H)      == b_ih + b_hh
                   w_fc_ref,     # (O, H)      == W_fc (PyTorch layout)
                   b_fc_ref,     # (1, O)
                   out_ref,      # (T, B, O)   per-step outputs (after fc)
                   hN_ref,       # (B, H)      final hidden state
                   hist_scr):    # VMEM (T, B, H) f32 : hidden-state history
    T, B, I = x_ref.shape
    H = w_hh_ref.shape[0]
    O = out_ref.shape[2]

    # ---- (1) Hoisted input projection: pre[t] = x_t @ W_ih^T + (b_ih + b_hh) ----
    # I is tiny (==1), so this is a pure elementwise broadcast on the VPU for all
    # T steps at once; no MXU push/pop or VMEM traffic inside the serial loop.
    x = x_ref[...].astype(jnp.float32)                        # (T, B, I)
    pre = x[:, :, 0:1] * w_ih_ref[0:1, :] + b_rnn_ref[...]    # (T, B, H), vreg-resident
    for i in range(1, I):                                     # general I (static)
        pre = pre + x[:, :, i:i + 1] * w_ih_ref[i:i + 1, :]

    # ---- (2) Serial recurrence: h_t = tanh(pre[t] + h_{t-1} @ W_hh^T) ----
    # T is a static compile-time constant and tiny -> full static Python unroll.
    # h lives in vregs the whole time; only the history is spilled to VMEM (one
    # static-offset slab store per step) for the batched FC head below.
    w_hh = w_hh_ref[...]                                      # (H, H), hoisted load
    h = h0_ref[...].astype(jnp.float32)                       # (B, H)
    for t in range(T):
        h = jnp.tanh(
            pre[t]                                            # static vreg slice
            + jnp.dot(h, w_hh, preferred_element_type=jnp.float32))   # (B, H) on MXU
        hist_scr[t] = h                                       # static-index store
    hN_ref[...] = h.astype(hN_ref.dtype)                      # single write at the end

    # ---- (3) Batched FC head: one pass over the whole (T, B, H) history ----
    hs = hist_scr[...]                                        # (T, B, H) f32, one load
    cols = [
        jnp.sum(hs * w_fc_ref[o:o + 1, :], axis=-1, keepdims=True)   # (T, B, 1)
        + b_fc_ref[:, o:o + 1]
        for o in range(O)
    ]
    y = cols[0] if O == 1 else jnp.concatenate(cols, axis=-1)  # (T, B, O)
    out_ref[...] = y.astype(out_ref.dtype)                     # single wide store


@functools.partial(jax.jit, static_argnames=())
def brownian_motion_forward(x, hidden, params):
    """x: (B, T, I) float32, hidden: (1, B, H) float32.

    Returns (out, hidden_out) with out: (B, T, O), hidden_out: (1, B, H),
    matching nn.RNN(tanh, batch_first=True) followed by nn.Linear.
    """
    w_ih, w_hh, b_ih, b_hh, w_fc, b_fc = params
    B, T, I = x.shape
    H = w_hh.shape[0]
    O = w_fc.shape[0]

    # Glue (tiny one-time ops, fused by XLA): batch-first -> time-major, fold the
    # hidden layer dim, pre-transpose the recurrence weights, fold the two biases.
    x_tm = jnp.transpose(x, (1, 0, 2))                   # (T, B, I)
    h0 = hidden[0]                                       # (B, H)
    w_ih_t = w_ih.T                                      # (I, H)
    w_hh_t = w_hh.T                                      # (H, H)
    b_rnn = (b_ih + b_hh).reshape(1, H)                  # (1, H)
    b_fc_r = b_fc.reshape(1, O)                          # (1, O)

    vmem = pl.BlockSpec(memory_space=pltpu.MemorySpace.VMEM)
    out_tm, h_n = pl.pallas_call(
        _rnn_fc_kernel,
        out_shape=(jax.ShapeDtypeStruct((T, B, O), jnp.float32),
                   jax.ShapeDtypeStruct((B, H), jnp.float32)),
        in_specs=[vmem] * 7,
        out_specs=(vmem, vmem),
        scratch_shapes=[pltpu.VMEM((T, B, H), jnp.float32)],   # hidden-state history
    )(x_tm, h0, w_ih_t, w_hh_t, b_rnn, w_fc, b_fc_r)

    out = jnp.transpose(out_tm, (1, 0, 2))               # (B, T, O)
    return out, h_n[None, :, :]                          # (1, B, H)


def _reference_forward(x, hidden, params):
    """Pure-JAX reference mirroring nn.RNN(tanh, batch_first) + nn.Linear."""
    w_ih, w_hh, b_ih, b_hh, w_fc, b_fc = params
    h = hidden[0]
    outs = []
    for t in range(x.shape[1]):
        h = jnp.tanh(x[:, t, :] @ w_ih.T + b_ih + h @ w_hh.T + b_hh)
        outs.append(h @ w_fc.T + b_fc)
    return jnp.stack(outs, axis=1), h[None, :, :]


def init_params(key, input_size=INPUT_SIZE, hidden_size=HIDDEN_SIZE,
                output_size=OUTPUT_SIZE):
    """Deterministic init matching PyTorch parameter shapes (uniform +-1/sqrt(H))."""
    k = jax.random.split(key, 6)
    s = 1.0 / jnp.sqrt(jnp.float32(hidden_size))
    u = lambda kk, shape: jax.random.uniform(kk, shape, jnp.float32, -s, s)
    w_ih = u(k[0], (hidden_size, input_size))    # rnn.weight_ih_l0
    w_hh = u(k[1], (hidden_size, hidden_size))   # rnn.weight_hh_l0
    b_ih = u(k[2], (hidden_size,))               # rnn.bias_ih_l0
    b_hh = u(k[3], (hidden_size,))               # rnn.bias_hh_l0
    w_fc = u(k[4], (output_size, hidden_size))   # fc.weight
    b_fc = u(k[5], (output_size,))               # fc.bias
    return (w_ih, w_hh, b_ih, b_hh, w_fc, b_fc)


if __name__ == "__main__":
    key = jax.random.PRNGKey(0)
    kx, kp = jax.random.split(key)

    batch, seq = 2, 8
    x = jax.random.normal(kx, (batch, seq, INPUT_SIZE), jnp.float32)
    hidden = jnp.zeros((1, batch, HIDDEN_SIZE), jnp.float32)
    params = init_params(kp)

    out, h_n = brownian_motion_forward(x, hidden, params)
    out, h_n = jax.block_until_ready(out), jax.block_until_ready(h_n)

    ref_out, ref_h = _reference_forward(x, hidden, params)
    assert out.shape == (batch, seq, OUTPUT_SIZE)
    assert h_n.shape == (1, batch, HIDDEN_SIZE)
    assert jnp.allclose(out, ref_out, atol=1e-5, rtol=1e-5)
    assert jnp.allclose(h_n, ref_h, atol=1e-5, rtol=1e-5)

    print("KERNEL_OK")
</pallas_src>

<mosaic_0001>
module attributes {stable_mosaic.version = 11 : i64} {
  func.func @_rnn_fc_kernel(%arg0: memref<8x2x1xf32, #tpu.memory_space<vmem>>, %arg1: memref<2x10xf32, #tpu.memory_space<vmem>>, %arg2: memref<1x10xf32, #tpu.memory_space<vmem>>, %arg3: memref<10x10xf32, #tpu.memory_space<vmem>>, %arg4: memref<1x10xf32, #tpu.memory_space<vmem>>, %arg5: memref<1x10xf32, #tpu.memory_space<vmem>>, %arg6: memref<1x1xf32, #tpu.memory_space<vmem>>, %arg7: memref<8x2x1xf32, #tpu.memory_space<vmem>>, %arg8: memref<2x10xf32, #tpu.memory_space<vmem>>, %arg9: memref<8x2x10xf32, #tpu.memory_space<vmem>>) attributes {dimension_semantics = [], scalar_prefetch = 0 : i64, scratch_operands = 1 : i64, tpu.core_type = #tpu.core_type<tc>} {
    %c0 = arith.constant 0 : index
    %c0_0 = arith.constant 0 : index
    %c0_1 = arith.constant 0 : index
    %0 = vector.load %arg0[%c0, %c0_0, %c0_1] : memref<8x2x1xf32, #tpu.memory_space<vmem>>, vector<8x2x1xf32>
    %c0_2 = arith.constant 0 : index
    %c0_3 = arith.constant 0 : index
    %1 = vector.load %arg2[%c0_2, %c0_3] : memref<1x10xf32, #tpu.memory_space<vmem>>, vector<1x10xf32>
    %2 = vector.shape_cast %1 : vector<1x10xf32> to vector<1x1x10xf32>
    %3 = vector.broadcast %0 : vector<8x2x1xf32> to vector<8x2x10xf32>
    %4 = vector.broadcast %2 : vector<1x1x10xf32> to vector<8x2x10xf32>
    %5 = arith.mulf %3, %4 : vector<8x2x10xf32>
    %c0_4 = arith.constant 0 : index
    %c0_5 = arith.constant 0 : index
    %6 = vector.load %arg4[%c0_4, %c0_5] : memref<1x10xf32, #tpu.memory_space<vmem>>, vector<1x10xf32>
    %7 = vector.shape_cast %6 : vector<1x10xf32> to vector<1x1x10xf32>
    %8 = vector.broadcast %7 : vector<1x1x10xf32> to vector<8x2x10xf32>
    %9 = arith.addf %5, %8 : vector<8x2x10xf32>
    %c0_6 = arith.constant 0 : index
    %c0_7 = arith.constant 0 : index
    %10 = vector.load %arg3[%c0_6, %c0_7] : memref<10x10xf32, #tpu.memory_space<vmem>>, vector<10x10xf32>
    %c0_8 = arith.constant 0 : index
    %c0_9 = arith.constant 0 : index
    %11 = vector.load %arg1[%c0_8, %c0_9] : memref<2x10xf32, #tpu.memory_space<vmem>>, vector<2x10xf32>
    %12 = vector.extract_strided_slice %9 {offsets = [0, 0, 0], sizes = [1, 2, 10], strides = [1, 1, 1]} : vector<8x2x10xf32> to vector<1x2x10xf32>
    %13 = vector.shape_cast %12 : vector<1x2x10xf32> to vector<2x10xf32>
    %cst = arith.constant dense<0.000000e+00> : vector<2x10xf32>
    %14 = tpu.matmul %11, %10, %cst {dimension_numbers = #tpu.dot_dimension_numbers<[1], [0], [0], [1], [0, 0, 1, 1], [], []>} : vector<2x10xf32>, vector<10x10xf32>, vector<2x10xf32> -> vector<2x10xf32>
    %15 = arith.addf %13, %14 : vector<2x10xf32>
    %16 = math.tanh %15 : vector<2x10xf32>
    %c0_10 = arith.constant 0 : index
    %c0_11 = arith.constant 0 : index
    %c0_12 = arith.constant 0 : index
    %17 = vector.load %arg9[%c0_10, %c0_11, %c0_12] : memref<8x2x10xf32, #tpu.memory_space<vmem>>, vector<1x2x10xf32>
    %18 = vector.shape_cast %17 : vector<1x2x10xf32> to vector<2x10xf32>
    %19 = vector.shape_cast %16 : vector<2x10xf32> to vector<1x2x10xf32>
    tpu.vector_store %arg9[%c0_10, %c0_11, %c0_12], %19 {strides = array<i32>} : memref<8x2x10xf32, #tpu.memory_space<vmem>>, vector<1x2x10xf32>,
    %20 = vector.extract_strided_slice %9 {offsets = [1, 0, 0], sizes = [1, 2, 10], strides = [1, 1, 1]} : vector<8x2x10xf32> to vector<1x2x10xf32>
    %21 = vector.shape_cast %20 : vector<1x2x10xf32> to vector<2x10xf32>
    %cst_13 = arith.constant dense<0.000000e+00> : vector<2x10xf32>
    %22 = tpu.matmul %16, %10, %cst_13 {dimension_numbers = #tpu.dot_dimension_numbers<[1], [0], [0], [1], [0, 0, 1, 1], [], []>} : vector<2x10xf32>, vector<10x10xf32>, vector<2x10xf32> -> vector<2x10xf32>
    %23 = arith.addf %21, %22 : vector<2x10xf32>
    %24 = math.tanh %23 : vector<2x10xf32>
    %c1 = arith.constant 1 : index
    %c0_14 = arith.constant 0 : index
    %c0_15 = arith.constant 0 : index
    %25 = vector.load %arg9[%c1, %c0_14, %c0_15] : memref<8x2x10xf32, #tpu.memory_space<vmem>>, vector<1x2x10xf32>
    %26 = vector.shape_cast %25 : vector<1x2x10xf32> to vector<2x10xf32>
    %27 = vector.shape_cast %24 : vector<2x10xf32> to vector<1x2x10xf32>
    tpu.vector_store %arg9[%c1, %c0_14, %c0_15], %27 {strides = array<i32>} : memref<8x2x10xf32, #tpu.memory_space<vmem>>, vector<1x2x10xf32>,
    %28 = vector.extract_strided_slice %9 {offsets = [2, 0, 0], sizes = [1, 2, 10], strides = [1, 1, 1]} : vector<8x2x10xf32> to vector<1x2x10xf32>
    %29 = vector.shape_cast %28 : vector<1x2x10xf32> to vector<2x10xf32>
    %cst_16 = arith.constant dense<0.000000e+00> : vector<2x10xf32>
    %30 = tpu.matmul %24, %10, %cst_16 {dimension_numbers = #tpu.dot_dimension_numbers<[1], [0], [0], [1], [0, 0, 1, 1], [], []>} : vector<2x10xf32>, vector<10x10xf32>, vector<2x10xf32> -> vector<2x10xf32>
    %31 = arith.addf %29, %30 : vector<2x10xf32>
    %32 = math.tanh %31 : vector<2x10xf32>
    %c2 = arith.constant 2 : index
    %c0_17 = arith.constant 0 : index
    %c0_18 = arith.constant 0 : index
    %33 = vector.load %arg9[%c2, %c0_17, %c0_18] : memref<8x2x10xf32, #tpu.memory_space<vmem>>, vector<1x2x10xf32>
    %34 = vector.shape_cast %33 : vector<1x2x10xf32> to vector<2x10xf32>
    %35 = vector.shape_cast %32 : vector<2x10xf32> to vector<1x2x10xf32>
    tpu.vector_store %arg9[%c2, %c0_17, %c0_18], %35 {strides = array<i32>} : memref<8x2x10xf32, #tpu.memory_space<vmem>>, vector<1x2x10xf32>,
    %36 = vector.extract_strided_slice %9 {offsets = [3, 0, 0], sizes = [1, 2, 10], strides = [1, 1, 1]} : vector<8x2x10xf32> to vector<1x2x10xf32>
    %37 = vector.shape_cast %36 : vector<1x2x10xf32> to vector<2x10xf32>
    %cst_19 = arith.constant dense<0.000000e+00> : vector<2x10xf32>
    %38 = tpu.matmul %32, %10, %cst_19 {dimension_numbers = #tpu.dot_dimension_numbers<[1], [0], [0], [1], [0, 0, 1, 1], [], []>} : vector<2x10xf32>, vector<10x10xf32>, vector<2x10xf32> -> vector<2x10xf32>
    %39 = arith.addf %37, %38 : vector<2x10xf32>
    %40 = math.tanh %39 : vector<2x10xf32>
    %c3 = arith.constant 3 : index
    %c0_20 = arith.constant 0 : index
    %c0_21 = arith.constant 0 : index
    %41 = vector.load %arg9[%c3, %c0_20, %c0_21] : memref<8x2x10xf32, #tpu.memory_space<vmem>>, vector<1x2x10xf32>
    %42 = vector.shape_cast %41 : vector<1x2x10xf32> to vector<2x10xf32>
    %43 = vector.shape_cast %40 : vector<2x10xf32> to vector<1x2x10xf32>
    tpu.vector_store %arg9[%c3, %c0_20, %c0_21], %43 {strides = array<i32>} : memref<8x2x10xf32, #tpu.memory_space<vmem>>, vector<1x2x10xf32>,
    %44 = vector.extract_strided_slice %9 {offsets = [4, 0, 0], sizes = [1, 2, 10], strides = [1, 1, 1]} : vector<8x2x10xf32> to vector<1x2x10xf32>
    %45 = vector.shape_cast %44 : vector<1x2x10xf32> to vector<2x10xf32>
    %cst_22 = arith.constant dense<0.000000e+00> : vector<2x10xf32>
    %46 = tpu.matmul %40, %10, %cst_22 {dimension_numbers = #tpu.dot_dimension_numbers<[1], [0], [0], [1], [0, 0, 1, 1], [], []>} : vector<2x10xf32>, vector<10x10xf32>, vector<2x10xf32> -> vector<2x10xf32>
    %47 = arith.addf %45, %46 : vector<2x10xf32>
    %48 = math.tanh %47 : vector<2x10xf32>
    %c4 = arith.constant 4 : index
    %c0_23 = arith.constant 0 : index
    %c0_24 = arith.constant 0 : index
    %49 = vector.load %arg9[%c4, %c0_23, %c0_24] : memref<8x2x10xf32, #tpu.memory_space<vmem>>, vector<1x2x10xf32>
    %50 = vector.shape_cast %49 : vector<1x2x10xf32> to vector<2x10xf32>
    %51 = vector.shape_cast %48 : vector<2x10xf32> to vector<1x2x10xf32>
    tpu.vector_store %arg9[%c4, %c0_23, %c0_24], %51 {strides = array<i32>} : memref<8x2x10xf32, #tpu.memory_space<vmem>>, vector<1x2x10xf32>,
    %52 = vector.extract_strided_slice %9 {offsets = [5, 0, 0], sizes = [1, 2, 10], strides = [1, 1, 1]} : vector<8x2x10xf32> to vector<1x2x10xf32>
    %53 = vector.shape_cast %52 : vector<1x2x10xf32> to vector<2x10xf32>
    %cst_25 = arith.constant dense<0.000000e+00> : vector<2x10xf32>
    %54 = tpu.matmul %48, %10, %cst_25 {dimension_numbers = #tpu.dot_dimension_numbers<[1], [0], [0], [1], [0, 0, 1, 1], [], []>} : vector<2x10xf32>, vector<10x10xf32>, vector<2x10xf32> -> vector<2x10xf32>
    %55 = arith.addf %53, %54 : vector<2x10xf32>
    %56 = math.tanh %55 : vector<2x10xf32>
    %c5 = arith.constant 5 : index
    %c0_26 = arith.constant 0 : index
    %c0_27 = arith.constant 0 : index
    %57 = vector.load %arg9[%c5, %c0_26, %c0_27] : memref<8x2x10xf32, #tpu.memory_space<vmem>>, vector<1x2x10xf32>
    %58 = vector.shape_cast %57 : vector<1x2x10xf32> to vector<2x10xf32>
    %59 = vector.shape_cast %56 : vector<2x10xf32> to vector<1x2x10xf32>
    tpu.vector_store %arg9[%c5, %c0_26, %c0_27], %59 {strides = array<i32>} : memref<8x2x10xf32, #tpu.memory_space<vmem>>, vector<1x2x10xf32>,
    %60 = vector.extract_strided_slice %9 {offsets = [6, 0, 0], sizes = [1, 2, 10], strides = [1, 1, 1]} : vector<8x2x10xf32> to vector<1x2x10xf32>
    %61 = vector.shape_cast %60 : vector<1x2x10xf32> to vector<2x10xf32>
    %cst_28 = arith.constant dense<0.000000e+00> : vector<2x10xf32>
    %62 = tpu.matmul %56, %10, %cst_28 {dimension_numbers = #tpu.dot_dimension_numbers<[1], [0], [0], [1], [0, 0, 1, 1], [], []>} : vector<2x10xf32>, vector<10x10xf32>, vector<2x10xf32> -> vector<2x10xf32>
    %63 = arith.addf %61, %62 : vector<2x10xf32>
    %64 = math.tanh %63 : vector<2x10xf32>
    %c6 = arith.constant 6 : index
    %c0_29 = arith.constant 0 : index
    %c0_30 = arith.constant 0 : index
    %65 = vector.load %arg9[%c6, %c0_29, %c0_30] : memref<8x2x10xf32, #tpu.memory_space<vmem>>, vector<1x2x10xf32>
    %66 = vector.shape_cast %65 : vector<1x2x10xf32> to vector<2x10xf32>
    %67 = vector.shape_cast %64 : vector<2x10xf32> to vector<1x2x10xf32>
    tpu.vector_store %arg9[%c6, %c0_29, %c0_30], %67 {strides = array<i32>} : memref<8x2x10xf32, #tpu.memory_space<vmem>>, vector<1x2x10xf32>,
    %68 = vector.extract_strided_slice %9 {offsets = [7, 0, 0], sizes = [1, 2, 10], strides = [1, 1, 1]} : vector<8x2x10xf32> to vector<1x2x10xf32>
    %69 = vector.shape_cast %68 : vector<1x2x10xf32> to vector<2x10xf32>
    %cst_31 = arith.constant dense<0.000000e+00> : vector<2x10xf32>
    %70 = tpu.matmul %64, %10, %cst_31 {dimension_numbers = #tpu.dot_dimension_numbers<[1], [0], [0], [1], [0, 0, 1, 1], [], []>} : vector<2x10xf32>, vector<10x10xf32>, vector<2x10xf32> -> vector<2x10xf32>
    %71 = arith.addf %69, %70 : vector<2x10xf32>
    %72 = math.tanh %71 : vector<2x10xf32>
    %c7 = arith.constant 7 : index
    %c0_32 = arith.constant 0 : index
    %c0_33 = arith.constant 0 : index
    %73 = vector.load %arg9[%c7, %c0_32, %c0_33] : memref<8x2x10xf32, #tpu.memory_space<vmem>>, vector<1x2x10xf32>
    %74 = vector.shape_cast %73 : vector<1x2x10xf32> to vector<2x10xf32>
    %75 = vector.shape_cast %72 : vector<2x10xf32> to vector<1x2x10xf32>
    tpu.vector_store %arg9[%c7, %c0_32, %c0_33], %75 {strides = array<i32>} : memref<8x2x10xf32, #tpu.memory_space<vmem>>, vector<1x2x10xf32>,
    %c0_34 = arith.constant 0 : index
    %c0_35 = arith.constant 0 : index
    %76 = vector.load %arg8[%c0_34, %c0_35] : memref<2x10xf32, #tpu.memory_space<vmem>>, vector<2x10xf32>
    tpu.vector_store %arg8[%c0_34, %c0_35], %72 {strides = array<i32>} : memref<2x10xf32, #tpu.memory_space<vmem>>, vector<2x10xf32>,
    %c0_36 = arith.constant 0 : index
    %c0_37 = arith.constant 0 : index
    %c0_38 = arith.constant 0 : index
    %77 = vector.load %arg9[%c0_36, %c0_37, %c0_38] : memref<8x2x10xf32, #tpu.memory_space<vmem>>, vector<8x2x10xf32>
    %c0_39 = arith.constant 0 : index
    %c0_40 = arith.constant 0 : index
    %78 = vector.load %arg5[%c0_39, %c0_40] : memref<1x10xf32, #tpu.memory_space<vmem>>, vector<1x10xf32>
    %79 = vector.shape_cast %78 : vector<1x10xf32> to vector<1x1x10xf32>
    %80 = vector.broadcast %79 : vector<1x1x10xf32> to vector<8x2x10xf32>
    %81 = arith.mulf %77, %80 : vector<8x2x10xf32>
    %cst_41 = arith.constant dense<0.000000e+00> : vector<8x2xf32>
    %82 = vector.multi_reduction <add>, %81, %cst_41 [2] : vector<8x2x10xf32> to vector<8x2xf32>
    %83 = vector.shape_cast %82 : vector<8x2xf32> to vector<8x2x1xf32>
    %c0_42 = arith.constant 0 : index
    %c0_43 = arith.constant 0 : index
    %84 = vector.load %arg6[%c0_42, %c0_43] : memref<1x1xf32, #tpu.memory_space<vmem>>, vector<1x1xf32>
    %85 = vector.shape_cast %84 : vector<1x1xf32> to vector<1x1x1xf32>
    %86 = vector.broadcast %85 : vector<1x1x1xf32> to vector<8x2x1xf32>
    %87 = arith.addf %83, %86 : vector<8x2x1xf32>
    %c0_44 = arith.constant 0 : index
    %c0_45 = arith.constant 0 : index
    %c0_46 = arith.constant 0 : index
    %88 = vector.load %arg7[%c0_44, %c0_45, %c0_46] : memref<8x2x1xf32, #tpu.memory_space<vmem>>, vector<8x2x1xf32>
    tpu.vector_store %arg7[%c0_44, %c0_45, %c0_46], %87 {strides = array<i32>} : memref<8x2x1xf32, #tpu.memory_space<vmem>>, vector<8x2x1xf32>,
    return
  }
}

</mosaic_0001>

<bundles_post_ra>
// kernel: brownian_motion_forward.1
= control target key start
LH: loop header
LB: loop body
LE: loop exit
PB: predicated region body
PF: predicated region fallthrough
CT: control target
= control target key end

     0   :  { %s686_s0 = inlined_call_operand.vmem [shape: f32[8,2,1], index: 0, kind: input, shape index: {}]   ;;  %s687_s1 = inlined_call_operand.vmem [shape: f32[2,10], index: 1, kind: input, shape index: {}]   ;;  %s688_s2 = inlined_call_operand.vmem [shape: f32[1,10], index: 2, kind: input, shape index: {}]   ;;  %s689_s3 = inlined_call_operand.vmem [shape: f32[10,10], index: 3, kind: input, shape index: {}]   ;;  %s690_s4 = inlined_call_operand.vmem [shape: f32[1,10], index: 4, kind: input, shape index: {}]   ;;  %s691_s5 = inlined_call_operand.vmem [shape: f32[1,10], index: 5, kind: input, shape index: {}]   ;;  %s692_s6 = inlined_call_operand.<no memory space> [shape: f32[1,1], index: 6, kind: input, shape index: {}]   ;;  %s693_s7 = inlined_call_operand.vmem [shape: f32[8,2,1], index: 7, kind: output, shape index: {0}]   ;;  %s694_s8 = inlined_call_operand.hbm [shape: f32[2,10], index: 8, kind: output, shape index: {1}]  }
   0x1   :  { %v14_v0 = vstv %s692_s6 }
   0x2   :  { %15 = vst [vmem:[#allocation3] sm:$0x1] %v14_v0 }
   0x3   :  { %v104_v1 = vld [vmem:[%s689_s3 + $0x8] sm:$0x3]  ;;  %vm110_vm0 = vcmask 1041408   ;;  %v31_v2 = vld [vmem:[%s686_s0] sm:$0x3]  ;;  %v480_v3 = vmov 0  }
   0x4   :  { %413 = vmatpush.msk.msra.mxu0 %vm110_vm0, %v104_v1  ;;  %431 = vset.pattern.permute.xlu0 %v480_v3  ;;  %v103_v4 = vld [vmem:[%s689_s3] sm:$0xff]  ;;  %vm106_vm1 = vcmask 80896   ;;  %v35_v6 = vld [vmem:[%s686_s0 + $0x8] sm:$0x3] }
   0x5   :  { %v105_v5 = vld [vmem:[%s687_s1] sm:$0x3]  ;;  %42 = vperm.xlu0 %431, %v31_v2   ;;  %433 = vset.pattern.permute.xlu2 %v480_v3 }
   0x6   :  { %129 = vmatpush.msra.mxu0 %v103_v4  ;;  %62 = vperm.xlu2 %433, %v35_v6  }
   0x7   :  { %414 = vmatmul.msk.f32.vlgmr.msra.gmra.mxu0 %vm106_vm1, %v105_v5  ;;  %415 = vmatpush.msk.msra.mxu1 %vm110_vm0, %v104_v1 }
   0x8   :  { %16 = vsyncpa [#allocation5], 0  ;;  %432 = vset.pattern.permute.xlu1 %v480_v3  ;;  %417 = vmatpush.msk.msra.mxu2 %vm110_vm0, %v104_v1  ;;  %v32_v7 = vld [vmem:[%s686_s0 + $0x2] sm:$0x3]  ;;  %v36_v8 = vld [vmem:[%s686_s0 + $0xa] sm:$0x3] }
   0x9   :  { %156 = vmatpush.msra.mxu1 %v103_v4  ;;  %419 = vmatpush.msk.msra.mxu3 %vm110_vm0, %v104_v1  ;;  %v37_v9 = vld [vmem:[%s686_s0 + $0xc] sm:$0x3]  ;;  %v566_v10 = vld [vmem:[%s688_s2] ss:$0 sm:$0xff]  ;;  %vm136_vm2 = vcmask 74752   ;;  %vm384_vm3 = vcmask 1024  }
   0xa   :  { %183 = vmatpush.msra.mxu2 %v103_v4  ;;  %421 = vmatpush.msk.msrb.mxu0 %vm110_vm0, %v104_v1  ;;  %v572_v13 = vld [vmem:[%s690_s4] ss:$0 sm:$0xff]  ;;  %v33_v22 = vld [vmem:[%s686_s0 + $0x4] sm:$0x3]  ;;  %v34_v23 = vld [vmem:[%s686_s0 + $0x6] sm:$0x3] }
   0xb   :  { %210 = vmatpush.msra.mxu3 %v103_v4  ;;  %423 = vmatpush.msk.msrb.mxu1 %vm110_vm0, %v104_v1  ;;  %v580_v18 = vld [vmem:[%s691_s5] ss:$0 sm:$0xff]  ;;  %v38_v25 = vld [vmem:[%s686_s0 + $0xe] sm:$0x3]  ;;  %v596_v29 = vld [vmem:[#allocation3] ss:$0 sm:$0xff] }
   0xc   :  { %237 = vmatpush.msrb.mxu0 %v103_v4  ;;  %425 = vmatpush.msk.msrb.mxu2 %vm110_vm0, %v104_v1  ;;  %s481_s17 = smov [#allocation4]   ;;  %s402_s21 = sshll.u32 %s694_s8, 4  ;;  %s403_s21 = int_to_ptr.hbm [resolvable:$true] %s402_s21 }
   0xd   :  { %47 = vperm.xlu0 %431, %v32_v7   ;;  %264 = vmatpush.msrb.mxu1 %v103_v4  ;;  %s400_s18 = sshll.u32 %s481_s17, 4  ;;  %s401_s18 = int_to_ptr.vmem [resolvable:$true] %s400_s18 }
   0xe   :  { %67 = vperm.xlu2 %433, %v36_v8   ;;  %291 = vmatpush.msrb.mxu2 %v103_v4 }
   0xf   :  { %427 = vmatpush.msk.msrb.mxu3 %vm110_vm0, %v104_v1  ;;  %52 = vperm.xlu1 %432, %v33_v22  }
  0x11   :  { %318 = vmatpush.msrb.mxu3 %v103_v4 }
  0x15   :  { %72 = vperm.xlu0 %431, %v37_v9  }
  0x17   :  { %57 = vperm.xlu1 %432, %v34_v23  }
  0x1f   :  { %77 = vperm.xlu1 %432, %v38_v25  }
  0x60   :  { %v63_v24 = vpop.permute.xlu2 %62 }
  0x61   :  { %v87_v63 = vmul.f32 %v566_v10, %v63_v24 }
  0x63   :  { %v99_v0 = vadd.f32 %v572_v13, %v87_v63 }
  0x68   :  { %v593_v26 = vpop.permute.xlu2 %67 }
  0x69   :  { %v88_v9 = vmul.f32 %v566_v10, %v593_v26 }
  0x77   :  { %v43_v11 = vpop.permute.xlu0 %42 }
  0x78   :  { %v83_v12 = vmul.f32 %v566_v10, %v43_v11  ;;  %v100_v11 = vadd.f32 %v572_v13, %v88_v9 }
  0x7a   :  { %v95_v14 = vadd.f32 %v572_v13, %v83_v12 }
  0x7f   :  { %v48_v27 = vpop.permute.xlu0 %47 }
  0x80   :  { %v84_v28 = vmul.f32 %v566_v10, %v48_v27 }
  0x81   :  { %v53_v40 = vpop.permute.xlu1 %52 }
  0x82   :  { %v96_v30 = vadd.f32 %v572_v13, %v84_v28  ;;  %v85_v41 = vmul.f32 %v566_v10, %v53_v40 }
  0x84   :  { %v131_v15 = vpop.f32.mrf.mxu0  ;;  %v97_v44 = vadd.f32 %v572_v13, %v85_v41 }
  0x85   :  { %v134_v16 = vadd.f32 %v131_v15, %v95_v14 }
  0x87   :  { %438 = vtanh.f32 %v134_v16  ;;  %v608_v39 = vpop.permute.xlu0 %72 }
  0x88   :  { %v89_v22 = vmul.f32 %v566_v10, %v608_v39 }
  0x89   :  { %v58_v51 = vpop.permute.xlu1 %57 }
  0x8a   :  { %v86_v53 = vmul.f32 %v566_v10, %v58_v51  ;;  %v101_v25 = vadd.f32 %v572_v13, %v89_v22 }
  0x8c   :  { %v98_v56 = vadd.f32 %v572_v13, %v86_v53 }
  0x8d   :  { %v439_v17 = vpop.eup %438 }
  0x8e   :  { %137 = vst.msk [vmem:[#allocation2] sm:$0x3] %vm136_vm2, %v439_v17  ;;  %416 = vmatmul.msk.f32.vlgmr.msra.gmra.mxu1 %vm106_vm1, %v439_v17 }
  0x91   :  { %v78_v52 = vpop.permute.xlu1 %77 }
  0x95   :  { %v328_v19 = vld [vmem:[#allocation2] sm:$0x3] }
  0x96   :  { %v340_v20 = vmul.f32 %v580_v18, %v328_v19 }
  0x98   :  { %v348_v21 = vsel %vm136_vm2, %v340_v20, 0.0 }
  0x99   :  { %349 = vadd.xlane.f32.xlu2 %v348_v21 }
 0x10b   :  { %v158_v31 = vpop.f32.mrf.mxu1 }
 0x10c   :  { %v161_v32 = vadd.f32 %v158_v31, %v96_v30  ;;  %v350_v33 = vpop.xlane.xlu2 %349 }
 0x10d   :  { %v376_v34 = vadd.f32 %v596_v29, %v350_v33  ;;  %v90_v33 = vmul.f32 %v566_v10, %v78_v52 }
 0x10e   :  { %440 = vtanh.f32 %v161_v32 }
 0x10f   :  { %385 = vst.msk [vmem:[%s693_s7] sm:$0x3] %vm384_vm3, %v376_v34 }
 0x114   :  { %v441_v35 = vpop.eup %440 }
 0x115   :  { %164 = vst.msk [vmem:[#allocation2 + $0x2] sm:$0x3] %vm136_vm2, %v441_v35  ;;  %418 = vmatmul.msk.f32.vlgmr.msra.gmra.mxu2 %vm106_vm1, %v441_v35 }
 0x11c   :  { %v329_v36 = vld [vmem:[#allocation2 + $0x2] sm:$0x3] }
 0x11d   :  { %v341_v37 = vmul.f32 %v580_v18, %v329_v36  ;;  %v102_v36 = vadd.f32 %v572_v13, %v90_v33 }
 0x11f   :  { %v351_v38 = vsel %vm136_vm2, %v341_v37, 0.0 }
 0x120   :  { %352 = vadd.xlane.f32.xlu0 %v351_v38 }
 0x193   :  { %v353_v42 = vpop.xlane.xlu0 %352 }
 0x194   :  { %v377_v43 = vadd.f32 %v596_v29, %v353_v42 }
 0x196   :  { %386 = vst.msk [vmem:[%s693_s7 + $0x2] sm:$0x3] %vm384_vm3, %v377_v43 }
 0x198   :  { %v185_v45 = vpop.f32.mrf.mxu2 }
 0x199   :  { %v188_v46 = vadd.f32 %v185_v45, %v97_v44 }
 0x19b   :  { %442 = vtanh.f32 %v188_v46 }
 0x1a1   :  { %v443_v47 = vpop.eup %442 }
 0x1a2   :  { %191 = vst.msk [vmem:[#allocation2 + $0x4] sm:$0x3] %vm136_vm2, %v443_v47  ;;  %420 = vmatmul.msk.f32.vlgmr.msra.gmra.mxu3 %vm106_vm1, %v443_v47 }
 0x1a9   :  { %v330_v48 = vld [vmem:[#allocation2 + $0x4] sm:$0x3] }
 0x1aa   :  { %v342_v49 = vmul.f32 %v580_v18, %v330_v48 }
 0x1ac   :  { %v354_v50 = vsel %vm136_vm2, %v342_v49, 0.0 }
 0x1ad   :  { %355 = vadd.xlane.f32.xlu1 %v354_v50 }
 0x220   :  { %v356_v54 = vpop.xlane.xlu1 %355 }
 0x221   :  { %v378_v55 = vadd.f32 %v596_v29, %v356_v54 }
 0x223   :  { %387 = vst.msk [vmem:[%s693_s7 + $0x4] sm:$0x3] %vm384_vm3, %v378_v55 }
 0x225   :  { %v212_v57 = vpop.f32.mrf.mxu3 }
 0x226   :  { %v215_v58 = vadd.f32 %v212_v57, %v98_v56 }
 0x228   :  { %444 = vtanh.f32 %v215_v58 }
 0x22e   :  { %v445_v59 = vpop.eup %444 }
 0x22f   :  { %218 = vst.msk [vmem:[#allocation2 + $0x6] sm:$0x3] %vm136_vm2, %v445_v59  ;;  %422 = vmatmul.msk.f32.vlgmr.msrb.gmra.mxu0 %vm106_vm1, %v445_v59 }
 0x236   :  { %v331_v60 = vld [vmem:[#allocation2 + $0x6] sm:$0x3] }
 0x237   :  { %v343_v61 = vmul.f32 %v580_v18, %v331_v60 }
 0x239   :  { %v357_v62 = vsel %vm136_vm2, %v343_v61, 0.0 }
 0x23a   :  { %358 = vadd.xlane.f32.xlu2 %v357_v62 }
 0x2ac   :  { %v239_v1 = vpop.f32.mrf.mxu0 }
 0x2ad   :  { %v242_v2 = vadd.f32 %v239_v1, %v99_v0  ;;  %v359_v3 = vpop.xlane.xlu2 %358 }
 0x2ae   :  { %v379_v4 = vadd.f32 %v596_v29, %v359_v3 }
 0x2af   :  { %446 = vtanh.f32 %v242_v2 }
 0x2b0   :  { %388 = vst.msk [vmem:[%s693_s7 + $0x6] sm:$0x3] %vm384_vm3, %v379_v4 }
 0x2b5   :  { %v447_v5 = vpop.eup %446 }
 0x2b6   :  { %245 = vst.msk [vmem:[#allocation2 + $0x8] sm:$0x3] %vm136_vm2, %v447_v5  ;;  %424 = vmatmul.msk.f32.vlgmr.msrb.gmra.mxu1 %vm106_vm1, %v447_v5 }
 0x2bd   :  { %v332_v6 = vld [vmem:[#allocation2 + $0x8] sm:$0x3] }
 0x2be   :  { %v344_v7 = vmul.f32 %v580_v18, %v332_v6 }
 0x2c0   :  { %v360_v8 = vsel %vm136_vm2, %v344_v7, 0.0 }
 0x2c1   :  { %361 = vadd.xlane.f32.xlu2 %v360_v8 }
 0x333   :  { %v266_v12 = vpop.f32.mrf.mxu1 }
 0x334   :  { %v269_v14 = vadd.f32 %v266_v12, %v100_v11  ;;  %v362_v15 = vpop.xlane.xlu2 %361 }
 0x335   :  { %v380_v16 = vadd.f32 %v596_v29, %v362_v15 }
 0x336   :  { %448 = vtanh.f32 %v269_v14 }
 0x337   :  { %389 = vst.msk [vmem:[%s693_s7 + $0x8] sm:$0x3] %vm384_vm3, %v380_v16 }
 0x33c   :  { %v449_v17 = vpop.eup %448 }
 0x33d   :  { %272 = vst.msk [vmem:[#allocation2 + $0xa] sm:$0x3] %vm136_vm2, %v449_v17  ;;  %426 = vmatmul.msk.f32.vlgmr.msrb.gmra.mxu2 %vm106_vm1, %v449_v17 }
 0x344   :  { %v333_v19 = vld [vmem:[#allocation2 + $0xa] sm:$0x3] }
 0x345   :  { %v345_v20 = vmul.f32 %v580_v18, %v333_v19 }
 0x347   :  { %v363_v21 = vsel %vm136_vm2, %v345_v20, 0.0 }
 0x348   :  { %364 = vadd.xlane.f32.xlu0 %v363_v21 }
 0x3bb   :  { %v365_v23 = vpop.xlane.xlu0 %364 }
 0x3bc   :  { %v381_v24 = vadd.f32 %v596_v29, %v365_v23 }
 0x3be   :  { %390 = vst.msk [vmem:[%s693_s7 + $0xa] sm:$0x3] %vm384_vm3, %v381_v24 }
 0x3c0   :  { %v293_v26 = vpop.f32.mrf.mxu2 }
 0x3c1   :  { %v296_v27 = vadd.f32 %v293_v26, %v101_v25 }
 0x3c3   :  { %450 = vtanh.f32 %v296_v27 }
 0x3c9   :  { %v451_v28 = vpop.eup %450 }
 0x3ca   :  { %299 = vst.msk [vmem:[#allocation2 + $0xc] sm:$0x3] %vm136_vm2, %v451_v28  ;;  %428 = vmatmul.msk.f32.vlgmr.msrb.gmra.mxu3 %vm106_vm1, %v451_v28 }
 0x3d1   :  { %v334_v30 = vld [vmem:[#allocation2 + $0xc] sm:$0x3] }
 0x3d2   :  { %v346_v31 = vmul.f32 %v580_v18, %v334_v30 }
 0x3d4   :  { %v366_v32 = vsel %vm136_vm2, %v346_v31, 0.0 }
 0x3d5   :  { %367 = vadd.xlane.f32.xlu1 %v366_v32 }
 0x448   :  { %v368_v34 = vpop.xlane.xlu1 %367 }
 0x449   :  { %v382_v35 = vadd.f32 %v596_v29, %v368_v34 }
 0x44b   :  { %391 = vst.msk [vmem:[%s693_s7 + $0xc] sm:$0x3] %vm384_vm3, %v382_v35 }
 0x44d   :  { %v320_v37 = vpop.f32.mrf.mxu3 }
 0x44e   :  { %v323_v38 = vadd.f32 %v320_v37, %v102_v36 }
 0x450   :  { %452 = vtanh.f32 %v323_v38 }
 0x456   :  { %v453_v39 = vpop.eup %452 }
 0x457   :  { %326 = vst.msk [vmem:[#allocation2 + $0xe] sm:$0x3] %vm136_vm2, %v453_v39 }
 0x458   :  { %327 = vst.msk [vmem:[#allocation4] sm:$0x3] %vm136_vm2, %v453_v39 }
 0x459   :  { %405 = dma.vmem_to_hbm [thread:$0]  %s401_s18, 32, %s403_s21, [#allocation5]  }
 0x45e   :  { %v335_v10 = vld [vmem:[#allocation2 + $0xe] sm:$0x3] }
 0x45f   :  { %v347_v13 = vmul.f32 %v580_v18, %v335_v10 }
 0x461   :  { %v369_v40 = vsel %vm136_vm2, %v347_v13, 0.0 }
 0x462   :  { %370 = vadd.xlane.f32.xlu2 %v369_v40 }
 0x4d5   :  { %v371_v41 = vpop.xlane.xlu2 %370 }
 0x4d6   :  { %v383_v42 = vadd.f32 %v596_v29, %v371_v41 }
 0x4d8   :  { %392 = vst.msk [vmem:[%s693_s7 + $0xe] sm:$0x3] %vm384_vm3, %v383_v42 }
 0x4d9   :  { %478 = dma.done.wait [#allocation5], 32  }
 0x4da   :  { %479 = vsyncadd [#allocation5], 4294967264 }
 0x4db   :  { %412 = vsyncpa [#allocation5], 1 }

</bundles_post_ra>
